<compile_context>
chip_gen: v6e
topology: v6e:2x2x1
jax: 0.10.0
libtpu: 0.0.40
codegen_flags: <defaults>
</compile_context>

<pallas_src>
import jax
import jax.numpy as jnp
from jax.experimental import pallas as pl
from jax.experimental.pallas import tpu as pltpu


# ----------------------- roll-direction probe (one-off) ---------------------- #

_ROLL_LIKE_JNP = None


def _roll_matches_jnp_semantics():
    """Tiny one-off probe: does pltpu.roll follow jnp.roll's direction?

    Only used to pick the sign of the static per-tap lane shifts, so the main
    kernel is robust to either rotate-direction convention. Must be called
    outside jit (the wrapper below is not jitted).
    """
    global _ROLL_LIKE_JNP
    if _ROLL_LIKE_JNP is None:
        def probe(x_ref, o_ref):
            o_ref[...] = pltpu.roll(x_ref[...], shift=1, axis=1)

        x = jax.lax.broadcasted_iota(jnp.float32, (8, 128), 1)
        y = pl.pallas_call(
            probe, out_shape=jax.ShapeDtypeStruct((8, 128), jnp.float32))(x)
        # jnp.roll(x, 1, axis=1)[:, 0] == 127 (last element wraps to front)
        _ROLL_LIKE_JNP = bool(y[0, 0] == 127.0)
    return _ROLL_LIKE_JNP


# ----------------------------- Pallas kernel -------------------------------- #

def _make_block_kernel(H, W, HW, Cp, L, roll_like_jnp):
    # 3x3 taps: k = ky*3 + kx, (dy, dx) = (ky-1, kx-1)
    taps = [(k, k // 3 - 1, k % 3 - 1) for k in range(9)]

    def lane_shift(z, d):
        # shifted[:, p] = z[:, p + d]; wrapped values are garbage but are
        # always zeroed by the caller's border mask.
        if d == 0:
            return z
        s = (-d) % L if roll_like_jnp else d % L
        return pltpu.roll(z, shift=s, axis=1)

    def kernel(x_ref, w1_ref, w2_ref, s1_ref, b1_ref, s2_ref, b2_ref, m_ref,
               o_ref):
        # x_ref/o_ref : (Cp, L) lane-dense activation slab (NB whole images)
        # w*_ref      : (9, Cp, Cp) per-tap masked conv weights (resident VMEM)
        # s/b/m refs  : (Cp, 1) folded BN scale/shift and shortcut mask
        x = x_ref[...]                                          # (Cp, L) f32

        # image-local row/col per lane position, for the 3x3 zero-pad masks
        pos = jax.lax.broadcasted_iota(jnp.int32, (1, L), 1)
        local = pos % HW
        row = local // W
        col = local - row * W

        def conv3x3(z, w_ref):
            # 3x3 / stride 1 / pad 1 conv == 9 shifted (Cp,Cp)@(Cp,L) matmuls.
            acc = jnp.zeros((Cp, L), jnp.float32)
            for k, dy, dx in taps:
                shifted = lane_shift(z, dy * W + dx)
                if dy or dx:
                    valid = ((row + dy >= 0) & (row + dy < H) &
                             (col + dx >= 0) & (col + dx < W))
                    shifted = jnp.where(valid, shifted, 0.0)
                acc = acc + jnp.dot(
                    w_ref[k], shifted,
                    preferred_element_type=jnp.float32,
                    precision=jax.lax.Precision.HIGHEST)
            return acc

        h = conv3x3(x, w1_ref)                                   # conv1
        h = jnp.maximum(h * s1_ref[...] + b1_ref[...], 0.0)      # bn1 + relu
        h = conv3x3(h, w2_ref)                                   # conv2
        h = h * s2_ref[...] + b2_ref[...]                        # bn2
        h = h + x * m_ref[...]                                   # sparse id shortcut
        o_ref[...] = jnp.maximum(h, 0.0)                         # final relu

    return kernel


def basic_block_mock_forward(x, w1_masked, w2_masked, bn1_scale, bn1_shift,
                             bn2_scale, bn2_shift, shortcut_mask,
                             images_per_step=8):
    N, C, H, W = x.shape
    HW = H * W
    f32 = jnp.float32
    Cp = ((C + 7) // 8) * 8          # pad channels to a sublane multiple of 8
    pad_c = Cp - C

    # largest divisor of N that is <= images_per_step (whole images per step)
    NB = 1
    for cand in range(min(N, images_per_step), 0, -1):
        if N % cand == 0:
            NB = cand
            break
    L = NB * HW                      # lane extent per grid step (multiple of 256)

    # lane-dense, channel-major activation slab: (Cp, N*H*W)
    x_t = jnp.transpose(x.astype(f32), (1, 0, 2, 3)).reshape(C, N * HW)
    x_t = jnp.pad(x_t, ((0, pad_c), (0, 0)))

    def prep_w(w):                   # OIHW -> tap-major (9, Cp_out, Cp_in)
        wt = jnp.transpose(w.astype(f32), (2, 3, 0, 1)).reshape(9, C, C)
        return jnp.pad(wt, ((0, 0), (0, pad_c), (0, pad_c)))

    def prep_v(v):                   # (C,) -> (Cp, 1) sublane-broadcast column
        return jnp.pad(v.astype(f32).reshape(C, 1), ((0, pad_c), (0, 0)))

    w1_t, w2_t = prep_w(w1_masked), prep_w(w2_masked)
    s1, b1 = prep_v(bn1_scale), prep_v(bn1_shift)
    s2, b2 = prep_v(bn2_scale), prep_v(bn2_shift)
    m = prep_v(shortcut_mask)

    kernel = _make_block_kernel(H, W, HW, Cp, L, _roll_matches_jnp_semantics())

    act_spec = pl.BlockSpec((Cp, L), lambda g: (0, g))
    w_spec = pl.BlockSpec((9, Cp, Cp), lambda g: (0, 0, 0))   # resident VMEM
    v_spec = pl.BlockSpec((Cp, 1), lambda g: (0, 0))          # resident VMEM

    grid_spec = pltpu.PrefetchScalarGridSpec(
        num_scalar_prefetch=0,
        grid=(N // NB,),
        in_specs=[act_spec, w_spec, w_spec,
                  v_spec, v_spec, v_spec, v_spec, v_spec],
        out_specs=act_spec,
    )
    out_t = pl.pallas_call(
        kernel,
        out_shape=jax.ShapeDtypeStruct((Cp, N * HW), f32),
        grid_spec=grid_spec,
        compiler_params=pltpu.CompilerParams(
            dimension_semantics=("parallel",)),
    )(x_t, w1_t, w2_t, s1, b1, s2, b2, m)

    # back to NCHW, dropping the channel padding
    return jnp.transpose(out_t[:C].reshape(C, N, H, W), (1, 0, 2, 3))


# ------------------------ parameter prep (plain JAX glue) -------------------- #

def kronecker(a, b):
    return jnp.einsum('ab,cd->acbd', a, b).reshape(
        a.shape[0] * b.shape[0], a.shape[1] * b.shape[1])


def binarize_by_threshold(conn):
    return jnp.where(conn > 0.5, jnp.ones_like(conn), jnp.zeros_like(conn))


def masked_conv_weight(weight, connectivity, out_channels, in_channels):
    bc = binarize_by_threshold(connectivity)
    factors = (out_channels // connectivity.shape[0],
               in_channels // connectivity.shape[1])
    if factors == (1, 1):
        cur = bc
    else:
        cur = kronecker(bc, jnp.ones(factors, weight.dtype))
    return weight * cur.reshape(out_channels, in_channels, 1, 1)


def fold_bn(gamma, beta, mean, var, eps=1e-5):
    scale = gamma / jnp.sqrt(var + eps)
    shift = beta - mean * scale
    return scale, shift


# ------------------------------- reference ----------------------------------- #

def ref_forward(x, w1m, w2m, s1, b1, s2, b2, mask):
    def conv3x3(h, w):
        return jax.lax.conv_general_dilated(
            h, w, window_strides=(1, 1), padding=((1, 1), (1, 1)),
            dimension_numbers=('NCHW', 'OIHW', 'NCHW'),
            precision=jax.lax.Precision.HIGHEST)
    h = conv3x3(x, w1m)
    h = jnp.maximum(h * s1[None, :, None, None] + b1[None, :, None, None], 0.0)
    h = conv3x3(h, w2m)
    h = h * s2[None, :, None, None] + b2[None, :, None, None]
    h = h + x * mask[None, :, None, None]
    return jnp.maximum(h, 0.0)


# --------------------------------- main --------------------------------------- #

if __name__ == "__main__":
    key = jax.random.PRNGKey(0)
    keys = jax.random.split(key, 12)
    N, C, H, W = 2, 4, 16, 16   # in_planes == planes == 4, stride == 1

    x = jax.random.normal(keys[0], (N, C, H, W), jnp.float32)

    # ordinary_conv weights (OIHW), bias disabled (if_enable_bias=False)
    w1 = 0.3 * jax.random.normal(keys[1], (C, C, 3, 3), jnp.float32)
    w2 = 0.3 * jax.random.normal(keys[2], (C, C, 3, 3), jnp.float32)

    # connectivity (2, 2): exercises BinarizeByThreshold + kronecker expansion to (4, 4)
    conn1 = jax.random.uniform(keys[3], (2, 2), jnp.float32)
    conn2 = jax.random.uniform(keys[4], (2, 2), jnp.float32)
    conn3 = jax.random.uniform(keys[5], (C,), jnp.float32)   # shortcut mask, used as-is

    w1m = masked_conv_weight(w1, conn1, C, C)
    w2m = masked_conv_weight(w2, conn2, C, C)

    # BatchNorm (inference mode), deterministic non-trivial params
    g1 = 1.0 + 0.1 * jax.random.normal(keys[6], (C,), jnp.float32)
    be1 = 0.1 * jax.random.normal(keys[7], (C,), jnp.float32)
    m1 = 0.1 * jax.random.normal(keys[8], (C,), jnp.float32)
    v1 = jax.random.uniform(keys[9], (C,), jnp.float32, 0.5, 1.5)
    g2 = 1.0 + 0.1 * jax.random.normal(keys[10], (C,), jnp.float32)
    be2 = 0.1 * jax.random.normal(keys[11], (C,), jnp.float32)
    m2 = jnp.zeros((C,), jnp.float32)
    v2 = jnp.ones((C,), jnp.float32)

    s1, b1 = fold_bn(g1, be1, m1, v1)
    s2, b2 = fold_bn(g2, be2, m2, v2)

    out = basic_block_mock_forward(x, w1m, w2m, s1, b1, s2, b2, conn3)
    out = jax.block_until_ready(out)

    ref = ref_forward(x, w1m, w2m, s1, b1, s2, b2, conn3)
    max_err = float(jnp.max(jnp.abs(out - ref)))
    assert jnp.allclose(out, ref, atol=1e-3, rtol=1e-3), max_err
    print("KERNEL_OK")
</pallas_src>

<mosaic_0001>
module attributes {stable_mosaic.version = 11 : i64} {
  func.func @probe(%arg0: memref<8x128xf32, #tpu.memory_space<vmem>>, %arg1: memref<8x128xf32, #tpu.memory_space<vmem>>) attributes {dimension_semantics = [], scalar_prefetch = 0 : i64, scratch_operands = 0 : i64, tpu.core_type = #tpu.core_type<tc>} {
    %c0 = arith.constant 0 : index
    %c0_0 = arith.constant 0 : index
    %0 = vector.load %arg0[%c0, %c0_0] : memref<8x128xf32, #tpu.memory_space<vmem>>, vector<8x128xf32>
    %c1_i32 = arith.constant 1 : i32
    %1 = tpu.dynamic_rotate %0 by %c1_i32 dim 1 : vector<8x128xf32>, i32 -> vector<8x128xf32>
    %c0_1 = arith.constant 0 : index
    %c0_2 = arith.constant 0 : index
    %2 = vector.load %arg1[%c0_1, %c0_2] : memref<8x128xf32, #tpu.memory_space<vmem>>, vector<8x128xf32>
    tpu.vector_store %arg1[%c0_1, %c0_2], %1 {strides = array<i32>} : memref<8x128xf32, #tpu.memory_space<vmem>>, vector<8x128xf32>,
    return
  }
}

</mosaic_0001>

<bundles_post_ra>
// kernel: tpu_custom_call.1
= control target key start
LH: loop header
LB: loop body
LE: loop exit
PB: predicated region body
PF: predicated region fallthrough
CT: control target
= control target key end

     0   :  { %6 = vsyncpa [#allocation3], 0  ;;  %s106_s0 = inlined_call_operand.hbm [shape: f32[8,128], index: 0, kind: input, shape index: {}]   ;;  %s107_s1 = inlined_call_operand.hbm [shape: f32[8,128], index: 1, kind: output, shape index: {}]  }
   0x1   :  { %7 = vsyncpa [#allocation4], 0  ;;  %s87_s6 = smov [#allocation2]  }
   0x2   :  { %s14_s7 = sshll.u32 %s87_s6, 4  ;;  %s15_s7 = int_to_ptr.vmem [resolvable:$true] %s14_s7 }
   0x3   :  { %s51_s8 = scalar_lea.vmem %s15_s7, 128  ;;  %p56_p1 = scmp.lt.s32.totalorder %s15_s7, %s15_s7 }
   0x4   :  { %p52_p0 = scmp.ne.s32.totalorder %s15_s7, %s51_s8  ;;  %p57_p2 = scmp.lt.s32.totalorder %s51_s8, %s51_s8 }
   0x6   :  { %p58_p3 = por %p57_p2, %p56_p1 }
   0x8   :  { %p59_p4 = pnand %p58_p3, %p52_p0 }
   0xa   :  { %62 = shalt.err (!%p59_p4)
}
   0xb   :  { %17 = dma.hbm_to_vmem [thread:$0]  %s106_s0, 128, %s15_s7, [#allocation3]  }
   0xc   :  { %83 = dma.done.wait [#allocation3], 128  }
   0xd   :  { %84 = vsyncadd [#allocation3], 4294967168  ;;  %v21_v0 = vld [vmem:[#allocation2] sm:$0xff]  ;;  %s88_s11 = smov 1   ;;  %s89_s12 = smov [#allocation5]  }
   0xe   :  { %22 = vrot.lane.b32.xlu0 %v21_v0, %s88_s11  ;;  %s31_s13 = sshll.u32 %s89_s12, 4  ;;  %s32_s13 = int_to_ptr.vmem [resolvable:$true] %s31_s13 }
   0xf   :  { %s63_s14 = scalar_lea.vmem %s32_s13, 128  ;;  %p68_p6 = scmp.lt.s32.totalorder %s32_s13, %s32_s13 }
  0x10   :  { %p64_p5 = scmp.ne.s32.totalorder %s32_s13, %s63_s14  ;;  %p69_p7 = scmp.lt.s32.totalorder %s63_s14, %s63_s14 }
  0x12   :  { %p70_p8 = por %p69_p7, %p68_p6 }
  0x14   :  { %p71_p9 = pnand %p70_p8, %p64_p5 }
  0x80   :  { %v23_v1 = vpop.permute.xlu0 %22 }
  0x81   :  { %24 = vst [vmem:[#allocation5] sm:$0xff] %v23_v1 }
  0x82   :  { %74 = shalt.err (!%p71_p9)
}
  0x83   :  { %34 = dma.vmem_to_hbm [thread:$0]  %s32_s13, 128, %s107_s1, [#allocation4]  }
  0x84   :  { %85 = dma.done.wait [#allocation4], 128  }
  0x85   :  { %86 = vsyncadd [#allocation4], 4294967168 }
  0x86   :  { %38 = vsyncpa [#allocation3], 1 }
  0x87   :  { %39 = vsyncpa [#allocation4], 1 }

</bundles_post_ra>
